<compile_context>
chip_gen: v5e
topology: v5e:2x2
jax: 0.10.0
libtpu: 0.0.40
codegen_flags: <defaults>
</compile_context>

<pallas_src>
import functools

import jax
import jax.numpy as jnp
from jax.experimental import pallas as pl
from jax.experimental.pallas import tpu as pltpu

DATA_DIM = 3
HIDDEN = 10
LOG2E = 1.4426950408889634   # log2(e) == 1/ln(2)
NEG_INIT = -1.0e30           # finite "-inf": masked lanes never create NaNs


def _round_up(a: int, b: int) -> int:
    return (a + b - 1) // b * b


def _tensorcores_per_chip() -> int:
    """Best-effort TC count; defaults to 1 (correct for v5e/v6e)."""
    try:
        info = pltpu.get_tpu_info()
        for attr in ("num_cores", "tensorcores_per_chip", "num_tensorcores",
                     "cores_per_chip", "num_tensor_cores"):
            v = getattr(info, attr, None)
            if v:
                return int(v)
    except Exception:
        pass
    return 1


def _mine_kernel(x_ref, yy_ref, w1x_ref, w1y_ref, b1_ref, w2_ref,
                 psum_ref, pmax_ref, pexp_ref,
                 acc_hsum, acc_max, acc_exp,
                 *, tile, n_valid, need_mask, feat):
    i = pl.program_id(0)            # parallel (core) split axis
    j = pl.program_id(1)            # batch-tile (reduction) axis
    nsteps = pl.num_programs(1)

    @pl.when(j == 0)
    def _init():
        acc_hsum[...] = jnp.zeros_like(acc_hsum)
        acc_max[...] = jnp.full_like(acc_max, NEG_INIT)
        acc_exp[...] = jnp.zeros_like(acc_exp)

    x = x_ref[...]                  # (F, T)
    w1x = w1x_ref[...]              # (H, F)
    w1y = w1y_ref[...]              # (H, 1)
    b1 = b1_ref[...]                # (H, 1)
    w2 = w2_ref[...]                # (H, 1)

    # Layer 1 on the VPU: 5 broadcast MACs instead of a zero-padded MXU dot.
    hx = w1x[:, 0:1] * x[0:1, :]                          # (H, T)
    for f in range(1, feat):
        hx = hx + w1x[:, f:f + 1] * x[f:f + 1, :]
    hxb = hx + b1                                         # shared bias add

    y = yy_ref[0:1, :]                                    # (1, T) joint
    yp = yy_ref[1:2, :]                                   # (1, T) marginal
    h_joint = jnp.maximum(hxb + w1y * y, 0.0)             # (H, T)
    h_marg = jnp.maximum(hxb + w1y * yp, 0.0)             # (H, T)

    # Layer 2 only needed per-element for the marginal branch (exp is inside).
    l_marg = jnp.sum(w2 * h_marg, axis=0, keepdims=True)  # (1, T), XLU reduce

    def _accumulate(valid):
        if valid is None:
            hj, lm = h_joint, l_marg
        else:
            hj = jnp.where(valid, h_joint, 0.0)
            lm = jnp.where(valid, l_marg, NEG_INIT)
        # Joint branch: sum_t l_joint = w2 . sum_t h_joint -> (H,1) accumulator.
        acc_hsum[...] += jnp.sum(hj, axis=1, keepdims=True)
        # Marginal branch: streaming (running-max) sum of exp(logit).
        m_old = acc_max[...]
        m_new = jnp.maximum(m_old, jnp.max(lm, keepdims=True))
        e = jnp.exp(lm - m_new)
        if valid is not None:
            e = jnp.where(valid, e, 0.0)
        acc_exp[...] = acc_exp[...] * jnp.exp(m_old - m_new) \
            + jnp.sum(e, keepdims=True)
        acc_max[...] = m_new

    if need_mask:
        tile_start = (i * nsteps + j) * tile
        is_tail = tile_start + tile > n_valid

        @pl.when(jnp.logical_not(is_tail))
        def _full_tile():
            _accumulate(None)

        @pl.when(is_tail)
        def _tail_tile():
            lane = jax.lax.broadcasted_iota(jnp.int32, (1, tile), 1)
            _accumulate(tile_start + lane < n_valid)
    else:
        _accumulate(None)

    @pl.when(j == nsteps - 1)
    def _finalize():
        psum_ref[...] = jnp.sum(w2 * acc_hsum[...]).reshape(1, 1, 1)
        pmax_ref[...] = acc_max[...].reshape(1, 1, 1)
        pexp_ref[...] = acc_exp[...].reshape(1, 1, 1)


def mine_forward(params, x, y, o, perm, *, tile=32768, splits=None):
    """Pallas-TPU forward pass of MINE.  `o` is unused (matches the reference)."""
    del o
    w1, b1, w2, b2 = params
    del b2  # cancels algebraically in mean(joint) - log(mean(exp(marginal)))

    B, F = x.shape                                # F == 2*DATA_DIM - 1 == 5
    H = w1.shape[1]

    x = x.astype(jnp.float32)
    y = jnp.asarray(y, jnp.float32).reshape(B)
    yy = jnp.stack([y, y[perm]], axis=0)          # (2, B): joint / marginal rows

    # Lane-dense layout: batch on the last (lane) dim.  The transpose is the
    # only wrapper-side copy; the 128-lane round-up fuses into it for free.
    # TODO(synk): have the data producer emit x feature-major (F, B) so even
    # this single transpose copy disappears.
    B_pad = _round_up(B, 128)
    xt = jnp.transpose(x)                         # (F, B)
    if B_pad != B:
        pad = B_pad - B
        xt = jnp.pad(xt, ((0, 0), (0, pad)))
        yy = jnp.pad(yy, ((0, 0), (0, pad)))

    # Tiling: T lanes per grid step; optional core-parallel split for v7x.
    T = min(_round_up(tile, 128), B_pad)
    total_tiles = pl.cdiv(B_pad, T)
    if splits is None:
        splits = 2 if (_tensorcores_per_chip() >= 2 and total_tiles >= 2) else 1
    splits = max(1, min(int(splits), total_tiles))
    if total_tiles % splits != 0:
        splits = 1
    steps = total_tiles // splits
    need_mask = (B % T) != 0                      # tail tiles exist

    # Split / transposed weights so the kernel computes (H, T) activations.
    w1x_t = jnp.transpose(w1[:F, :])              # (H, F)
    w1y_t = jnp.transpose(w1[F:, :])              # (H, 1)
    b1_t = b1.reshape(H, 1)                       # (H, 1)
    w2_c = w2.reshape(H, 1)                       # (H, 1)

    kernel = functools.partial(_mine_kernel, tile=T, n_valid=B,
                               need_mask=need_mask, feat=F)

    batch_map = lambda i, j: (0, i * steps + j)
    const_map = lambda i, j: (0, 0)
    part_shape = jax.ShapeDtypeStruct((splits, 1, 1), jnp.float32)

    psum, pmax, pexp = pl.pallas_call(
        kernel,
        out_shape=(part_shape, part_shape, part_shape),
        grid=(splits, steps),
        in_specs=[
            pl.BlockSpec((F, T), batch_map),      # x tile (streamed once, reused)
            pl.BlockSpec((2, T), batch_map),      # [y ; y[perm]] tile
            pl.BlockSpec((H, F), const_map),      # resident weights
            pl.BlockSpec((H, 1), const_map),
            pl.BlockSpec((H, 1), const_map),
            pl.BlockSpec((H, 1), const_map),
        ],
        out_specs=(
            pl.BlockSpec((1, 1, 1), lambda i, j: (i, 0, 0)),
            pl.BlockSpec((1, 1, 1), lambda i, j: (i, 0, 0)),
            pl.BlockSpec((1, 1, 1), lambda i, j: (i, 0, 0)),
        ),
        scratch_shapes=[pltpu.VMEM((H, 1), jnp.float32),
                        pltpu.VMEM((1, 1), jnp.float32),
                        pltpu.VMEM((1, 1), jnp.float32)],
        compiler_params=pltpu.CompilerParams(
            dimension_semantics=("parallel", "arbitrary"),
            vmem_limit_bytes=64 * 1024 * 1024),
    )(xt, yy, w1x_t, w1y_t, b1_t, w2_c)

    # Combine the tiny per-split partials in JAX (scalar math only).
    sum_joint = jnp.sum(psum[:, 0, 0])
    m = pmax[:, 0, 0]
    s = pexp[:, 0, 0]
    m_tot = jnp.max(m)
    s_tot = jnp.sum(s * jnp.exp(m - m_tot))
    mean_joint = sum_joint / B
    log_mean_exp = m_tot + jnp.log(s_tot / B)     # log(mean(exp(l_marginal)))
    return -LOG2E * (mean_joint - log_mean_exp)


def init_params(key, hidden_size=HIDDEN):
    """Deterministic init mirroring nn.Linear's U(-1/sqrt(fan_in), 1/sqrt(fan_in))."""
    in1 = 2 * DATA_DIM
    k1, k2, k3, k4 = jax.random.split(key, 4)
    bound1 = 1.0 / jnp.sqrt(in1)
    bound2 = 1.0 / jnp.sqrt(hidden_size)
    w1 = jax.random.uniform(k1, (in1, hidden_size), jnp.float32, -bound1, bound1)
    b1 = jax.random.uniform(k2, (1, hidden_size), jnp.float32, -bound1, bound1)
    w2 = jax.random.uniform(k3, (hidden_size, 1), jnp.float32, -bound2, bound2)
    b2 = jax.random.uniform(k4, (1, 1), jnp.float32, -bound2, bound2)
    return (w1, b1, w2, b2)


def _reference(params, x, y, perm):
    """Pure-JAX replica of the PyTorch forward (concats, b2 and all)."""
    w1, b1, w2, b2 = params
    B = x.shape[0]
    tiled_x = jnp.concatenate([x, x], axis=0)
    y_col = y.reshape(B, 1)
    concat_y = jnp.concatenate([y_col, y_col[perm]], axis=0)
    inputs = jnp.concatenate([tiled_x, concat_y], axis=1)
    h = jnp.maximum(
        jnp.dot(inputs, w1, precision=jax.lax.Precision.HIGHEST) + b1, 0.0)
    logits = jnp.dot(h, w2, precision=jax.lax.Precision.HIGHEST) + b2
    return -LOG2E * (jnp.mean(logits[:B])
                     - jnp.log(jnp.mean(jnp.exp(logits[B:]))))


if __name__ == "__main__":
    key = jax.random.PRNGKey(0)
    k_params, k_x1, k_y1, k_p1, k_x2, k_y2, k_p2, k_x3, k_y3, k_p3 = \
        jax.random.split(key, 10)
    params = init_params(k_params)

    # Case 1: ragged batch, multi-step pipeline, forced 2-way split, tail mask.
    B1 = 1000
    x1 = jax.random.normal(k_x1, (B1, 2 * DATA_DIM - 1), jnp.float32)
    y1 = jax.random.normal(k_y1, (B1,), jnp.float32)
    o1 = jnp.zeros((B1,), jnp.float32)                 # unused by the forward
    perm1 = jax.random.permutation(k_p1, B1)
    loss1 = jax.block_until_ready(
        mine_forward(params, x1, y1, o1, perm1, tile=256, splits=2))
    ref1 = _reference(params, x1, y1, perm1)
    assert jnp.allclose(loss1, ref1, atol=1e-4, rtol=1e-4), (loss1, ref1)

    # Case 2: tiny batch -> single tile, single split, heavy lane padding.
    B2 = 8
    x2 = jax.random.normal(k_x2, (B2, 2 * DATA_DIM - 1), jnp.float32)
    y2 = jax.random.normal(k_y2, (B2,), jnp.float32)
    o2 = jnp.zeros((B2,), jnp.float32)
    perm2 = jax.random.permutation(k_p2, B2)
    loss2 = jax.block_until_ready(mine_forward(params, x2, y2, o2, perm2))
    ref2 = _reference(params, x2, y2, perm2)
    assert jnp.allclose(loss2, ref2, atol=1e-4, rtol=1e-4), (loss2, ref2)

    # Case 3: batch divides the tile exactly -> static unmasked fast path.
    B3 = 2048
    x3 = jax.random.normal(k_x3, (B3, 2 * DATA_DIM - 1), jnp.float32)
    y3 = jax.random.normal(k_y3, (B3,), jnp.float32)
    o3 = jnp.zeros((B3,), jnp.float32)
    perm3 = jax.random.permutation(k_p3, B3)
    loss3 = jax.block_until_ready(
        mine_forward(params, x3, y3, o3, perm3, tile=512, splits=2))
    ref3 = _reference(params, x3, y3, perm3)
    assert jnp.allclose(loss3, ref3, atol=1e-4, rtol=1e-4), (loss3, ref3)

    print("KERNEL_OK")
</pallas_src>

<mosaic_0001>
module attributes {stable_mosaic.version = 11 : i64} {
  func.func @_mine_kernel(%arg0: i32, %arg1: i32, %arg2: memref<5x256xf32, #tpu.memory_space<vmem>>, %arg3: memref<2x256xf32, #tpu.memory_space<vmem>>, %arg4: memref<10x5xf32, #tpu.memory_space<vmem>>, %arg5: memref<10x1xf32, #tpu.memory_space<vmem>>, %arg6: memref<10x1xf32, #tpu.memory_space<vmem>>, %arg7: memref<10x1xf32, #tpu.memory_space<vmem>>, %arg8: memref<1x1x1xf32, #tpu.memory_space<vmem>>, %arg9: memref<1x1x1xf32, #tpu.memory_space<vmem>>, %arg10: memref<1x1x1xf32, #tpu.memory_space<vmem>>, %arg11: memref<10x1xf32, #tpu.memory_space<vmem>>, %arg12: memref<1x1xf32, #tpu.memory_space<vmem>>, %arg13: memref<1x1xf32, #tpu.memory_space<vmem>>) attributes {dimension_semantics = [#tpu.dimension_semantics<parallel>, #tpu.dimension_semantics<arbitrary>], iteration_bounds = array<i64: 2, 2>, scalar_prefetch = 0 : i64, scratch_operands = 3 : i64, tpu.core_type = #tpu.core_type<tc>, window_params = [{transform_indices = @transform_0, window_bounds = array<i64: 5, 256>}, {transform_indices = @transform_1, window_bounds = array<i64: 2, 256>}, {pipeline_mode = #tpu.pipeline_mode<synchronous>, transform_indices = @transform_2, window_bounds = array<i64: 10, 5>}, {pipeline_mode = #tpu.pipeline_mode<synchronous>, transform_indices = @transform_3, window_bounds = array<i64: 10, 1>}, {pipeline_mode = #tpu.pipeline_mode<synchronous>, transform_indices = @transform_4, window_bounds = array<i64: 10, 1>}, {pipeline_mode = #tpu.pipeline_mode<synchronous>, transform_indices = @transform_5, window_bounds = array<i64: 10, 1>}, {transform_indices = @transform_6, window_bounds = array<i64: 1, 1, 1>}, {transform_indices = @transform_7, window_bounds = array<i64: 1, 1, 1>}, {transform_indices = @transform_8, window_bounds = array<i64: 1, 1, 1>}]} {
    %c0_i32 = arith.constant 0 : i32
    %0 = arith.cmpi eq, %arg1, %c0_i32 : i32
    %1 = arith.extui %0 : i1 to i32
    %c0_i32_0 = arith.constant 0 : i32
    %2 = arith.cmpi ne, %1, %c0_i32_0 : i32
    scf.if %2 {
      %cst_19 = arith.constant 0.000000e+00 : f32
      %70 = vector.broadcast %cst_19 : f32 to vector<10x1xf32>
      %c0_20 = arith.constant 0 : index
      %c0_21 = arith.constant 0 : index
      %71 = vector.load %arg11[%c0_20, %c0_21] : memref<10x1xf32, #tpu.memory_space<vmem>>, vector<10x1xf32>
      tpu.vector_store %arg11[%c0_20, %c0_21], %70 {strides = array<i32>} : memref<10x1xf32, #tpu.memory_space<vmem>>, vector<10x1xf32>,
      %cst_22 = arith.constant -1.000000e+30 : f32
      %72 = vector.broadcast %cst_22 : f32 to vector<1x1xf32>
      %c0_23 = arith.constant 0 : index
      %c0_24 = arith.constant 0 : index
      %73 = vector.load %arg12[%c0_23, %c0_24] : memref<1x1xf32, #tpu.memory_space<vmem>>, vector<1x1xf32>
      tpu.vector_store %arg12[%c0_23, %c0_24], %72 {strides = array<i32>} : memref<1x1xf32, #tpu.memory_space<vmem>>, vector<1x1xf32>,
      %cst_25 = arith.constant 0.000000e+00 : f32
      %74 = vector.broadcast %cst_25 : f32 to vector<1x1xf32>
      %c0_26 = arith.constant 0 : index
      %c0_27 = arith.constant 0 : index
      %75 = vector.load %arg13[%c0_26, %c0_27] : memref<1x1xf32, #tpu.memory_space<vmem>>, vector<1x1xf32>
      tpu.vector_store %arg13[%c0_26, %c0_27], %74 {strides = array<i32>} : memref<1x1xf32, #tpu.memory_space<vmem>>, vector<1x1xf32>,
    } else {
    }
    %c0 = arith.constant 0 : index
    %c0_1 = arith.constant 0 : index
    %3 = vector.load %arg2[%c0, %c0_1] : memref<5x256xf32, #tpu.memory_space<vmem>>, vector<5x256xf32>
    %c0_2 = arith.constant 0 : index
    %c0_3 = arith.constant 0 : index
    %4 = vector.load %arg4[%c0_2, %c0_3] : memref<10x5xf32, #tpu.memory_space<vmem>>, vector<10x5xf32>
    %c0_4 = arith.constant 0 : index
    %c0_5 = arith.constant 0 : index
    %5 = vector.load %arg5[%c0_4, %c0_5] : memref<10x1xf32, #tpu.memory_space<vmem>>, vector<10x1xf32>
    %c0_6 = arith.constant 0 : index
    %c0_7 = arith.constant 0 : index
    %6 = vector.load %arg6[%c0_6, %c0_7] : memref<10x1xf32, #tpu.memory_space<vmem>>, vector<10x1xf32>
    %c0_8 = arith.constant 0 : index
    %c0_9 = arith.constant 0 : index
    %7 = vector.load %arg7[%c0_8, %c0_9] : memref<10x1xf32, #tpu.memory_space<vmem>>, vector<10x1xf32>
    %8 = vector.extract_strided_slice %4 {offsets = [0, 0], sizes = [10, 1], strides = [1, 1]} : vector<10x5xf32> to vector<10x1xf32>
    %9 = vector.extract_strided_slice %3 {offsets = [0, 0], sizes = [1, 256], strides = [1, 1]} : vector<5x256xf32> to vector<1x256xf32>
    %10 = vector.broadcast %8 : vector<10x1xf32> to vector<10x256xf32>
    %11 = vector.broadcast %9 : vector<1x256xf32> to vector<10x256xf32>
    %12 = arith.mulf %10, %11 : vector<10x256xf32>
    %13 = vector.extract_strided_slice %4 {offsets = [0, 1], sizes = [10, 1], strides = [1, 1]} : vector<10x5xf32> to vector<10x1xf32>
    %14 = vector.extract_strided_slice %3 {offsets = [1, 0], sizes = [1, 256], strides = [1, 1]} : vector<5x256xf32> to vector<1x256xf32>
    %15 = vector.broadcast %13 : vector<10x1xf32> to vector<10x256xf32>
    %16 = vector.broadcast %14 : vector<1x256xf32> to vector<10x256xf32>
    %17 = arith.mulf %15, %16 : vector<10x256xf32>
    %18 = arith.addf %12, %17 : vector<10x256xf32>
    %19 = vector.extract_strided_slice %4 {offsets = [0, 2], sizes = [10, 1], strides = [1, 1]} : vector<10x5xf32> to vector<10x1xf32>
    %20 = vector.extract_strided_slice %3 {offsets = [2, 0], sizes = [1, 256], strides = [1, 1]} : vector<5x256xf32> to vector<1x256xf32>
    %21 = vector.broadcast %19 : vector<10x1xf32> to vector<10x256xf32>
    %22 = vector.broadcast %20 : vector<1x256xf32> to vector<10x256xf32>
    %23 = arith.mulf %21, %22 : vector<10x256xf32>
    %24 = arith.addf %18, %23 : vector<10x256xf32>
    %25 = vector.extract_strided_slice %4 {offsets = [0, 3], sizes = [10, 1], strides = [1, 1]} : vector<10x5xf32> to vector<10x1xf32>
    %26 = vector.extract_strided_slice %3 {offsets = [3, 0], sizes = [1, 256], strides = [1, 1]} : vector<5x256xf32> to vector<1x256xf32>
    %27 = vector.broadcast %25 : vector<10x1xf32> to vector<10x256xf32>
    %28 = vector.broadcast %26 : vector<1x256xf32> to vector<10x256xf32>
    %29 = arith.mulf %27, %28 : vector<10x256xf32>
    %30 = arith.addf %24, %29 : vector<10x256xf32>
    %31 = vector.extract_strided_slice %4 {offsets = [0, 4], sizes = [10, 1], strides = [1, 1]} : vector<10x5xf32> to vector<10x1xf32>
    %32 = vector.extract_strided_slice %3 {offsets = [4, 0], sizes = [1, 256], strides = [1, 1]} : vector<5x256xf32> to vector<1x256xf32>
    %33 = vector.broadcast %31 : vector<10x1xf32> to vector<10x256xf32>
    %34 = vector.broadcast %32 : vector<1x256xf32> to vector<10x256xf32>
    %35 = arith.mulf %33, %34 : vector<10x256xf32>
    %36 = arith.addf %30, %35 : vector<10x256xf32>
    %37 = vector.broadcast %6 : vector<10x1xf32> to vector<10x256xf32>
    %38 = arith.addf %36, %37 : vector<10x256xf32>
    %c0_10 = arith.constant 0 : index
    %c0_11 = arith.constant 0 : index
    %39 = vector.load %arg3[%c0_10, %c0_11] : memref<2x256xf32, #tpu.memory_space<vmem>>, vector<1x256xf32>
    %c1 = arith.constant 1 : index
    %c0_12 = arith.constant 0 : index
    %40 = vector.load %arg3[%c1, %c0_12] : memref<2x256xf32, #tpu.memory_space<vmem>>, vector<1x256xf32>
    %41 = vector.broadcast %5 : vector<10x1xf32> to vector<10x256xf32>
    %42 = vector.broadcast %39 : vector<1x256xf32> to vector<10x256xf32>
    %43 = arith.mulf %41, %42 : vector<10x256xf32>
    %44 = arith.addf %38, %43 : vector<10x256xf32>
    %cst = arith.constant 0.000000e+00 : f32
    %45 = vector.broadcast %cst : f32 to vector<10x256xf32>
    %46 = arith.maximumf %44, %45 : vector<10x256xf32>
    %47 = vector.broadcast %5 : vector<10x1xf32> to vector<10x256xf32>
    %48 = vector.broadcast %40 : vector<1x256xf32> to vector<10x256xf32>
    %49 = arith.mulf %47, %48 : vector<10x256xf32>
    %50 = arith.addf %38, %49 : vector<10x256xf32>
    %cst_13 = arith.constant 0.000000e+00 : f32
    %51 = vector.broadcast %cst_13 : f32 to vector<10x256xf32>
    %52 = arith.maximumf %50, %51 : vector<10x256xf32>
    %53 = vector.broadcast %7 : vector<10x1xf32> to vector<10x256xf32>
    %54 = arith.mulf %53, %52 : vector<10x256xf32>
    %cst_14 = arith.constant dense<0.000000e+00> : vector<256xf32>
    %55 = vector.multi_reduction <add>, %54, %cst_14 [0] : vector<10x256xf32> to vector<256xf32>
    %56 = vector.shape_cast %55 : vector<256xf32> to vector<1x256xf32>
    %c2_i32 = arith.constant 2 : i32
    %57 = arith.muli %arg0, %c2_i32 : i32
    %58 = arith.addi %57, %arg1 : i32
    %c256_i32 = arith.constant 256 : i32
    %59 = arith.muli %58, %c256_i32 : i32
    %c256_i32_15 = arith.constant 256 : i32
    %60 = arith.addi %59, %c256_i32_15 : i32
    %c1000_i32 = arith.constant 1000 : i32
    %61 = arith.cmpi sgt, %60, %c1000_i32 : i32
    %true = arith.constant true
    %62 = arith.xori %61, %true : i1
    %63 = arith.extui %62 : i1 to i32
    %c0_i32_16 = arith.constant 0 : i32
    %64 = arith.cmpi ne, %63, %c0_i32_16 : i32
    scf.if %64 {
      %c0_19 = arith.constant 0 : index
      %c0_20 = arith.constant 0 : index
      %70 = vector.load %arg11[%c0_19, %c0_20] : memref<10x1xf32, #tpu.memory_space<vmem>>, vector<10x1xf32>
      %cst_21 = arith.constant dense<0.000000e+00> : vector<10xf32>
      %71 = vector.multi_reduction <add>, %46, %cst_21 [1] : vector<10x256xf32> to vector<10xf32>
      %72 = vector.shape_cast %71 : vector<10xf32> to vector<10x1xf32>
      %73 = arith.addf %70, %72 : vector<10x1xf32>
      %c0_22 = arith.constant 0 : index
      %c0_23 = arith.constant 0 : index
      %74 = vector.load %arg11[%c0_22, %c0_23] : memref<10x1xf32, #tpu.memory_space<vmem>>, vector<10x1xf32>
      tpu.vector_store %arg11[%c0_22, %c0_23], %73 {strides = array<i32>} : memref<10x1xf32, #tpu.memory_space<vmem>>, vector<10x1xf32>,
      %c0_24 = arith.constant 0 : index
      %c0_25 = arith.constant 0 : index
      %75 = vector.load %arg12[%c0_24, %c0_25] : memref<1x1xf32, #tpu.memory_space<vmem>>, vector<1x1xf32>
      %76 = vector.shape_cast %56 : vector<1x256xf32> to vector<1x1x256xf32>
      %cst_26 = arith.constant dense<0xFF800000> : vector<1xf32>
      %77 = vector.multi_reduction <maximumf>, %76, %cst_26 [1, 2] : vector<1x1x256xf32> to vector<1xf32>
      %78 = vector.shape_cast %77 : vector<1xf32> to vector<1x1x1xf32>
      %79 = vector.extract %78[0, 0, 0] : f32 from vector<1x1x1xf32>
      %80 = vector.broadcast %79 : f32 to vector<1x1xf32>
      %81 = arith.maximumf %75, %80 : vector<1x1xf32>
      %82 = vector.broadcast %81 : vector<1x1xf32> to vector<1x256xf32>
      %83 = arith.subf %56, %82 : vector<1x256xf32>
      %84 = math.exp %83 : vector<1x256xf32>
      %c0_27 = arith.constant 0 : index
      %c0_28 = arith.constant 0 : index
      %85 = vector.load %arg13[%c0_27, %c0_28] : memref<1x1xf32, #tpu.memory_space<vmem>>, vector<1x1xf32>
      %86 = arith.subf %75, %81 : vector<1x1xf32>
      %87 = math.exp %86 : vector<1x1xf32>
      %88 = arith.mulf %85, %87 : vector<1x1xf32>
      %89 = vector.shape_cast %84 : vector<1x256xf32> to vector<1x1x256xf32>
      %cst_29 = arith.constant dense<0.000000e+00> : vector<1xf32>
      %90 = vector.multi_reduction <add>, %89, %cst_29 [1, 2] : vector<1x1x256xf32> to vector<1xf32>
      %91 = vector.shape_cast %90 : vector<1xf32> to vector<1x1x1xf32>
      %92 = vector.extract %91[0, 0, 0] : f32 from vector<1x1x1xf32>
      %93 = vector.broadcast %92 : f32 to vector<1x1xf32>
      %94 = arith.addf %88, %93 : vector<1x1xf32>
      %c0_30 = arith.constant 0 : index
      %c0_31 = arith.constant 0 : index
      %95 = vector.load %arg13[%c0_30, %c0_31] : memref<1x1xf32, #tpu.memory_space<vmem>>, vector<1x1xf32>
      tpu.vector_store %arg13[%c0_30, %c0_31], %94 {strides = array<i32>} : memref<1x1xf32, #tpu.memory_space<vmem>>, vector<1x1xf32>,
      %c0_32 = arith.constant 0 : index
      %c0_33 = arith.constant 0 : index
      %96 = vector.load %arg12[%c0_32, %c0_33] : memref<1x1xf32, #tpu.memory_space<vmem>>, vector<1x1xf32>
      tpu.vector_store %arg12[%c0_32, %c0_33], %81 {strides = array<i32>} : memref<1x1xf32, #tpu.memory_space<vmem>>, vector<1x1xf32>,
    } else {
    }
    %65 = arith.extui %61 : i1 to i32
    %c0_i32_17 = arith.constant 0 : i32
    %66 = arith.cmpi ne, %65, %c0_i32_17 : i32
    scf.if %66 {
      %70 = tpu.iota {dimensions = array<i32: 1>} : vector<1x256xi32>
      %71 = vector.broadcast %59 : i32 to vector<1x256xi32>
      %72 = arith.addi %71, %70 : vector<1x256xi32>
      %c1000_i32_19 = arith.constant 1000 : i32
      %73 = vector.broadcast %c1000_i32_19 : i32 to vector<1x256xi32>
      %74 = arith.cmpi slt, %72, %73 : vector<1x256xi32>
      %cst_20 = arith.constant 0.000000e+00 : f32
      %75 = vector.shape_cast %74 : vector<1x256xi1> to vector<1x256xi1>
      %76 = vector.broadcast %75 : vector<1x256xi1> to vector<10x256xi1>
      %77 = vector.broadcast %cst_20 : f32 to vector<10x256xf32>
      %78 = arith.select %76, %46, %77 : vector<10x256xi1>, vector<10x256xf32>
      %cst_21 = arith.constant -1.000000e+30 : f32
      %79 = vector.broadcast %cst_21 : f32 to vector<1x256xf32>
      %80 = arith.select %74, %56, %79 : vector<1x256xi1>, vector<1x256xf32>
      %c0_22 = arith.constant 0 : index
      %c0_23 = arith.constant 0 : index
      %81 = vector.load %arg11[%c0_22, %c0_23] : memref<10x1xf32, #tpu.memory_space<vmem>>, vector<10x1xf32>
      %cst_24 = arith.constant dense<0.000000e+00> : vector<10xf32>
      %82 = vector.multi_reduction <add>, %78, %cst_24 [1] : vector<10x256xf32> to vector<10xf32>
      %83 = vector.shape_cast %82 : vector<10xf32> to vector<10x1xf32>
      %84 = arith.addf %81, %83 : vector<10x1xf32>
      %c0_25 = arith.constant 0 : index
      %c0_26 = arith.constant 0 : index
      %85 = vector.load %arg11[%c0_25, %c0_26] : memref<10x1xf32, #tpu.memory_space<vmem>>, vector<10x1xf32>
      tpu.vector_store %arg11[%c0_25, %c0_26], %84 {strides = array<i32>} : memref<10x1xf32, #tpu.memory_space<vmem>>, vector<10x1xf32>,
      %c0_27 = arith.constant 0 : index
      %c0_28 = arith.constant 0 : index
      %86 = vector.load %arg12[%c0_27, %c0_28] : memref<1x1xf32, #tpu.memory_space<vmem>>, vector<1x1xf32>
      %87 = vector.shape_cast %80 : vector<1x256xf32> to vector<1x1x256xf32>
      %cst_29 = arith.constant dense<0xFF800000> : vector<1xf32>
      %88 = vector.multi_reduction <maximumf>, %87, %cst_29 [1, 2] : vector<1x1x256xf32> to vector<1xf32>
      %89 = vector.shape_cast %88 : vector<1xf32> to vector<1x1x1xf32>
      %90 = vector.extract %89[0, 0, 0] : f32 from vector<1x1x1xf32>
      %91 = vector.broadcast %90 : f32 to vector<1x1xf32>
      %92 = arith.maximumf %86, %91 : vector<1x1xf32>
      %93 = vector.broadcast %92 : vector<1x1xf32> to vector<1x256xf32>
      %94 = arith.subf %80, %93 : vector<1x256xf32>
      %95 = math.exp %94 : vector<1x256xf32>
      %cst_30 = arith.constant 0.000000e+00 : f32
      %96 = vector.broadcast %cst_30 : f32 to vector<1x256xf32>
      %97 = arith.select %74, %95, %96 : vector<1x256xi1>, vector<1x256xf32>
      %c0_31 = arith.constant 0 : index
      %c0_32 = arith.constant 0 : index
      %98 = vector.load %arg13[%c0_31, %c0_32] : memref<1x1xf32, #tpu.memory_space<vmem>>, vector<1x1xf32>
      %99 = arith.subf %86, %92 : vector<1x1xf32>
      %100 = math.exp %99 : vector<1x1xf32>
      %101 = arith.mulf %98, %100 : vector<1x1xf32>
      %102 = vector.shape_cast %97 : vector<1x256xf32> to vector<1x1x256xf32>
      %cst_33 = arith.constant dense<0.000000e+00> : vector<1xf32>
      %103 = vector.multi_reduction <add>, %102, %cst_33 [1, 2] : vector<1x1x256xf32> to vector<1xf32>
      %104 = vector.shape_cast %103 : vector<1xf32> to vector<1x1x1xf32>
      %105 = vector.extract %104[0, 0, 0] : f32 from vector<1x1x1xf32>
      %106 = vector.broadcast %105 : f32 to vector<1x1xf32>
      %107 = arith.addf %101, %106 : vector<1x1xf32>
      %c0_34 = arith.constant 0 : index
      %c0_35 = arith.constant 0 : index
      %108 = vector.load %arg13[%c0_34, %c0_35] : memref<1x1xf32, #tpu.memory_space<vmem>>, vector<1x1xf32>
      tpu.vector_store %arg13[%c0_34, %c0_35], %107 {strides = array<i32>} : memref<1x1xf32, #tpu.memory_space<vmem>>, vector<1x1xf32>,
      %c0_36 = arith.constant 0 : index
      %c0_37 = arith.constant 0 : index
      %109 = vector.load %arg12[%c0_36, %c0_37] : memref<1x1xf32, #tpu.memory_space<vmem>>, vector<1x1xf32>
      tpu.vector_store %arg12[%c0_36, %c0_37], %92 {strides = array<i32>} : memref<1x1xf32, #tpu.memory_space<vmem>>, vector<1x1xf32>,
    } else {
    }
    %c1_i32 = arith.constant 1 : i32
    %67 = arith.cmpi eq, %arg1, %c1_i32 : i32
    %68 = arith.extui %67 : i1 to i32
    %c0_i32_18 = arith.constant 0 : i32
    %69 = arith.cmpi ne, %68, %c0_i32_18 : i32
    scf.if %69 {
      %c0_19 = arith.constant 0 : index
      %c0_20 = arith.constant 0 : index
      %70 = vector.load %arg11[%c0_19, %c0_20] : memref<10x1xf32, #tpu.memory_space<vmem>>, vector<10x1xf32>
      %71 = arith.mulf %7, %70 : vector<10x1xf32>
      %72 = vector.shape_cast %71 : vector<10x1xf32> to vector<1x10x1xf32>
      %cst_21 = arith.constant dense<0.000000e+00> : vector<1xf32>
      %73 = vector.multi_reduction <add>, %72, %cst_21 [1, 2] : vector<1x10x1xf32> to vector<1xf32>
      %74 = vector.shape_cast %73 : vector<1xf32> to vector<1x1x1xf32>
      %75 = vector.extract %74[0, 0, 0] : f32 from vector<1x1x1xf32>
      %76 = vector.broadcast %75 : f32 to vector<1x1x1xf32>
      %c0_22 = arith.constant 0 : index
      %c0_23 = arith.constant 0 : index
      %c0_24 = arith.constant 0 : index
      %77 = vector.load %arg8[%c0_22, %c0_23, %c0_24] : memref<1x1x1xf32, #tpu.memory_space<vmem>>, vector<1x1x1xf32>
      tpu.vector_store %arg8[%c0_22, %c0_23, %c0_24], %76 {strides = array<i32>} : memref<1x1x1xf32, #tpu.memory_space<vmem>>, vector<1x1x1xf32>,
      %c0_25 = arith.constant 0 : index
      %c0_26 = arith.constant 0 : index
      %78 = vector.load %arg12[%c0_25, %c0_26] : memref<1x1xf32, #tpu.memory_space<vmem>>, vector<1x1xf32>
      %79 = vector.shape_cast %78 : vector<1x1xf32> to vector<1x1x1xf32>
      %c0_27 = arith.constant 0 : index
      %c0_28 = arith.constant 0 : index
      %c0_29 = arith.constant 0 : index
      %80 = vector.load %arg9[%c0_27, %c0_28, %c0_29] : memref<1x1x1xf32, #tpu.memory_space<vmem>>, vector<1x1x1xf32>
      tpu.vector_store %arg9[%c0_27, %c0_28, %c0_29], %79 {strides = array<i32>} : memref<1x1x1xf32, #tpu.memory_space<vmem>>, vector<1x1x1xf32>,
      %c0_30 = arith.constant 0 : index
      %c0_31 = arith.constant 0 : index
      %81 = vector.load %arg13[%c0_30, %c0_31] : memref<1x1xf32, #tpu.memory_space<vmem>>, vector<1x1xf32>
      %82 = vector.shape_cast %81 : vector<1x1xf32> to vector<1x1x1xf32>
      %c0_32 = arith.constant 0 : index
      %c0_33 = arith.constant 0 : index
      %c0_34 = arith.constant 0 : index
      %83 = vector.load %arg10[%c0_32, %c0_33, %c0_34] : memref<1x1x1xf32, #tpu.memory_space<vmem>>, vector<1x1x1xf32>
      tpu.vector_store %arg10[%c0_32, %c0_33, %c0_34], %82 {strides = array<i32>} : memref<1x1x1xf32, #tpu.memory_space<vmem>>, vector<1x1x1xf32>,
    } else {
    }
    return
  }
  func.func @transform_0(%arg0: i32, %arg1: i32) -> (i32, i32) {
    %c2_i32 = arith.constant 2 : i32
    %0 = arith.muli %arg0, %c2_i32 : i32
    %1 = arith.addi %0, %arg1 : i32
    %c0_i32 = arith.constant 0 : i32
    %c0_i32_0 = arith.constant 0 : i32
    return %c0_i32, %1 : i32, i32
  }
  func.func @transform_1(%arg0: i32, %arg1: i32) -> (i32, i32) {
    %c2_i32 = arith.constant 2 : i32
    %0 = arith.muli %arg0, %c2_i32 : i32
    %1 = arith.addi %0, %arg1 : i32
    %c0_i32 = arith.constant 0 : i32
    %c0_i32_0 = arith.constant 0 : i32
    return %c0_i32, %1 : i32, i32
  }
  func.func @transform_2(%arg0: i32, %arg1: i32) -> (i32, i32) {
    %c0_i32 = arith.constant 0 : i32
    %c0_i32_0 = arith.constant 0 : i32
    %c0_i32_1 = arith.constant 0 : i32
    return %c0_i32, %c0_i32_0 : i32, i32
  }
  func.func @transform_3(%arg0: i32, %arg1: i32) -> (i32, i32) {
    %c0_i32 = arith.constant 0 : i32
    %c0_i32_0 = arith.constant 0 : i32
    %c0_i32_1 = arith.constant 0 : i32
    return %c0_i32, %c0_i32_0 : i32, i32
  }
  func.func @transform_4(%arg0: i32, %arg1: i32) -> (i32, i32) {
    %c0_i32 = arith.constant 0 : i32
    %c0_i32_0 = arith.constant 0 : i32
    %c0_i32_1 = arith.constant 0 : i32
    return %c0_i32, %c0_i32_0 : i32, i32
  }
  func.func @transform_5(%arg0: i32, %arg1: i32) -> (i32, i32) {
    %c0_i32 = arith.constant 0 : i32
    %c0_i32_0 = arith.constant 0 : i32
    %c0_i32_1 = arith.constant 0 : i32
    return %c0_i32, %c0_i32_0 : i32, i32
  }
  func.func @transform_6(%arg0: i32, %arg1: i32) -> (i32, i32, i32) {
    %c0_i32 = arith.constant 0 : i32
    %c0_i32_0 = arith.constant 0 : i32
    %c0_i32_1 = arith.constant 0 : i32
    return %arg0, %c0_i32, %c0_i32_0 : i32, i32, i32
  }
  func.func @transform_7(%arg0: i32, %arg1: i32) -> (i32, i32, i32) {
    %c0_i32 = arith.constant 0 : i32
    %c0_i32_0 = arith.constant 0 : i32
    %c0_i32_1 = arith.constant 0 : i32
    return %arg0, %c0_i32, %c0_i32_0 : i32, i32, i32
  }
  func.func @transform_8(%arg0: i32, %arg1: i32) -> (i32, i32, i32) {
    %c0_i32 = arith.constant 0 : i32
    %c0_i32_0 = arith.constant 0 : i32
    %c0_i32_1 = arith.constant 0 : i32
    return %arg0, %c0_i32, %c0_i32_0 : i32, i32, i32
  }
}

</mosaic_0001>

<bundles_post_ra>
// kernel: tpu_custom_call.1
= control target key start
LH: loop header
LB: loop body
LE: loop exit
PB: predicated region body
PF: predicated region fallthrough
CT: control target
= control target key end

     0   :  { %s1470_s0 = inlined_call_operand.hbm [shape: f32[5,1024], index: 0, kind: input, shape index: {}]   ;;  %s1471_s1 = inlined_call_operand.vmem [shape: f32[2,1024], index: 1, kind: input, shape index: {}]   ;;  %s1472_s2 = inlined_call_operand.vmem [shape: f32[10,5], index: 2, kind: input, shape index: {}]   ;;  %s1473_s3 = inlined_call_operand.vmem [shape: f32[10,1], index: 3, kind: input, shape index: {}]   ;;  %s1474_s4 = inlined_call_operand.vmem [shape: f32[10,1], index: 4, kind: input, shape index: {}]   ;;  %s1475_s5 = inlined_call_operand.vmem [shape: f32[10,1], index: 5, kind: input, shape index: {}]   ;;  %s1476_s6 = inlined_call_operand.vmem [shape: f32[2,1,1], index: 6, kind: output, shape index: {0}]   ;;  %s1477_s7 = inlined_call_operand.vmem [shape: f32[2,1,1], index: 7, kind: output, shape index: {1}]   ;;  %s1478_s8 = inlined_call_operand.vmem [shape: f32[2,1,1], index: 8, kind: output, shape index: {2}]  }
   0x1   :  { %1483 = sst [smem:[#allocation10_spill]] %s1474_s4 }
   0x2   :  { %1484 = sst [smem:[#allocation11_spill]] %s1475_s5 }
   0x3   :  { %14 = vsyncpa [#allocation6], 0 }
   0x4   :  { %16 = vsyncpa [#allocation6 + $0x1], 0  ;;  %s1201_s27 = smov 0   ;;  %s1203_s28 = smov 0  }
   0x5   :  { %s1205_s29 = smov 0   ;;  %s1207_s30 = smov 0  }
   0x6   :  { %s1209_s9 = smov 0   ;;  %s1211_s10 = smov 0  }
   0x7   :  { %s1213_s11 = smov 0   ;;  %s1215_s12 = smov 0  }
   0x8 LB: > { %1485 = sst [smem:[#allocation8_spill]] %s1137_s10  ;;  %s908_s13 = sadd.s32 4294967295, %s1145_s12   ;;  %s1145_s12 = sphi %s1215_s12, %s22_s12   ;;  %s1141_s11 = sphi %s1213_s11, %s1501_s11   ;;  %s1137_s10 = sphi %s1211_s10, %s1500_s10   ;;  %s1133_s9 = sphi %s1209_s9, %s1496_s9   ;;  %s1129_s30 = sphi %s1207_s30, %s1495_s30   ;;  %s1125_s29 = sphi %s1205_s29, %s1499_s29   ;;  %s1121_s28 = sphi %s1203_s28, %s1498_s28   ;;  %s1117_s27 = sphi %s1201_s27, %s1497_s27  }
   0x9   : > { %1486 = sst [smem:[#allocation9_spill]] %s1141_s11  ;;  %s31_s14 = sadd.s32 1, %s1137_s10 }
   0xa   : > { %p32_p0 = scmp.ge.s32.totalorder %s31_s14, 2  ;;  %s34_s15 = sadd.s32 1, %s1141_s11 }
   0xb   : > { %s910_s16 = sshll.u32 %s1141_s11, 1  ;;  %s45_s17 = sadd.s32 1, %s1125_s29 }
   0xc   : > { %s1503_s14 = smov (%p32_p0, %s31_s14), 0  ;;  %s1505_s15 = smov (!%p32_p0, %s34_s15), %s1141_s11 }
   0xd   : > { %s39_s18 = sadd.s32 %s1137_s10, %s910_s16  ;;  %p52_p1 = scmp.ne.s32.totalorder %s1125_s29, %s1121_s28 }
   0xe   : > { %p36_p2 = scmp.ge.s32.totalorder %s1505_s15, 2  ;;  %p53_p3 = scmp.eq.s32.totalorder %s1145_s12, 0 }
   0xf   : > { %p58_p4 = scmp.ne.s32.totalorder %s1121_s28, %s1117_s27  ;;  %p59_p5 = scmp.eq.s32.totalorder %s908_s13, 0 }
  0x10   : > { %s1507_s15 = smov (%p36_p2, %s1505_s15), 0  ;;  %p1254_p6 = por %p53_p3, %p52_p1 }
  0x11   : > { %p1258_p7 = por %p59_p5, %p58_p4  ;;  %s911_s21 = sshll.u32 %s1507_s15, 1 }
  0x12   : > { %s41_s22 = sadd.s32 %s911_s21, %s1503_s14  ;;  %p951_p8 = scmp.lt.s32.totalorder %s1145_s12, 4 }
  0x13   : > { %s42_s23 = ssub.s32 %s39_s18, %s41_s22  ;;  %s286_s24 = sand.u32 1, %s1125_s29  }
  0x14   : > { %p43_p9 = scmp.eq.s32.totalorder %s42_s23, 0  ;;  %s916_s25 = sshll.u32 %s286_s24, 4 }
  0x15   : > { %s934_s26 = sshll.u32 %s39_s18, 4  ;;  %s290_s5 = scalar_lea.vmem [#allocation5], %s916_s25 }
  0x16   : > { %s1267_s27 = scalar_select %p43_p9, %s1125_s29, %s45_s17  }
  0x17   : > { %s297_s11 = scalar_lea.hbm %s1470_s0, %s934_s26  ;;  %s301_s4 = sshll.u32 %s290_s5, 4  ;;  %s302_s4 = int_to_ptr.vmem [resolvable:$true] %s301_s4 }
  0x18   : > { %s299_s10 = sshll.u32 %s297_s11, 4  ;;  %p948_p10 = pnand %p951_p8, %p1254_p6  ;;  %s300_s10 = int_to_ptr.hbm [resolvable:$true] %s299_s10 }
  0x19   : > { %p920_p11 = scmp.ge.s32.totalorder %s1145_s12, 1  ;;  %p319_p12 = scmp.lt.s32.totalorder %s1145_s12, 5 }
  0x1a   : > { %s287_s21 = scalar_lea.sflag [#allocation6], %s286_s24 }
  0x1b   : > { %950 = dma.hbm_to_vmem [thread:$0]  (!%p948_p10), %s300_s10, 256, %s302_s4, %s287_s21  }
  0x1c   : > { %p320_p13 = pnand %p920_p11, %p319_p12 }
  0x1d   : > { %s325_s17 = sand.u32 (!%p320_p13), 1, %s1121_s28  }
  0x1e   : > { %323 = sbr.rel (%p320_p13) target bundleno = 1409 (0x581), region = 44  ;;  %s1279_s18 = sshll.u32 (!%p320_p13), %s325_s17, 4 }
  0x1f   : > { %s326_s11 = scalar_lea.sflag (!%p320_p13), [#allocation6], %s325_s17 }
  0x23   : > { %1112 = dma.done.wait (%p1258_p7), %s326_s11, 256  }
  0x24   : > { %1114 = vsyncadd (%p1258_p7), %s326_s11, 4294967040  ;;  %s922_s4 = sshll.u32 %s1133_s9, 1  ;;  %p387_p0 = scmp.lt.s32.totalorder %s1133_s9, 1 }
  0x25   : > { %s1289_s5 = sadd.s32 %s1129_s30, %s922_s4  ;;  %p925_p2 = scmp.ne.s32.totalorder %s1129_s30, 0 }
  0x26   : > { %s923_s10 = sshll.u32 %s1289_s5, 1  ;;  %s1509_s9 = smov (!%p387_p0, %s1133_s9), 1 }
  0x27   : > { %p380_p1 = scmp.lt.s32.totalorder %s923_s10, 7  ;;  %s389_s23 = scalar_lea.vmem %s1476_s6, %s1509_s9 }
  0x28   : > { %s392_s26 = scalar_lea.vmem %s1477_s7, %s1509_s9  ;;  %s395_s17 = scalar_lea.vmem %s1478_s8, %s1509_s9 }
  0x29   : > { %s1511_s10 = smov (!%p380_p1, %s923_s10), 7  ;;  %399 = sbr.rel (%p925_p2) target bundleno = 51 (0x33), region = 52 }
  0x2a   : > { %s924_s13 = sshll.u32 %s1511_s10, 1 }
  0x2b   : > { %s1310_s22 = scalar_lea.vmem %s1471_s1, %s924_s13 }
  0x2e   : > { %vm400_vm0 = vcmask 7168   ;;  %vm402_vm1 = vcmask 1024   ;;  %vm404_vm2 = vcmask 0   ;;  %v1147_v0 = vmov 0.0  }
  0x2f   : > { %401 = vst.msk [vmem:[#allocation2] sm:$0xff] %vm400_vm0, %v1147_v0  ;;  %v1148_v1 = vmov -1e+30  }
  0x30   : > { %403 = vst.msk [vmem:[#allocation2 + $0x8] sm:$0x3] %vm402_vm1, %v1147_v0 }
  0x31   : > { %405 = vst.msk [vmem:[#allocation3] sm:$0x1] %vm404_vm2, %v1148_v1 }
  0x32   : > { %406 = vst.msk [vmem:[#allocation4] sm:$0x1] %vm404_vm2, %v1147_v0 }
  0x33 PF: > { %v409_v2 = vld [vmem:[%s1472_s2] sm:$0xff]  ;;  %v1149_v3 = vmov 1   ;;  %v1150_v4 = vmov 0   ;;  %v1151_v5 = vmov 2   ;;  %v410_v6 = vld [vmem:[%s1472_s2 + $0x8] sm:$0x3] }
  0x34   : > { %1026 = vset.pattern.permute.xlu1 %v1149_v3  ;;  %1025 = vset.pattern.permute.xlu0 %v1150_v4  ;;  %v1152_v7 = vmov 3   ;;  %v1153_v8 = vmov 4   ;;  %v412_v9 = vld [vmem:[%s1473_s3 + $0x8] sm:$0x3]  ;;  %s1489_s11 = sld [smem:[#allocation10_spill]]  ;;  %v411_v12 = vld [vmem:[%s1473_s3] sm:$0xff] }
  0x35   : > { %434 = vperm.xlu1 %1026, %v409_v2   ;;  %419 = vperm.xlu0 %1025, %v409_v2   ;;  %s1491_s16 = sld [smem:[#allocation11_spill]]  ;;  %s928_s10 = sshll.u32 %s1289_s5, 8  ;;  %v519_v52 = vld [vmem:[%s1310_s22] ss:$2 sm:$0x3]  ;;  %vm580_vm3 = vcmask 1041408  }
  0x36   : > { %1027 = vset.pattern.permute.xlu2 %v1151_v5  ;;  %s1346_s19 = sadd.s32 256, %s928_s10  ;;  %s1492_s20 = scalar_lea.vmem [#allocation5], %s1279_s18  ;;  %v533_v59 = vperm.slane %v519_v52, 0  ;;  %v534_v60 = vperm.slane %v519_v52, 1 }
  0x37   : > { %452 = vperm.xlu2 %1027, %v409_v2   ;;  %v1350_v19 = vld [vmem:[%s1492_s20] sm:$0x1f]  ;;  %s1493_s24 = smov %s1492_s20  ;;  %p929_p3 = scmp.gt.s32.totalorder %s1346_s19, 1000 }
  0x38   : > { %v1354_v20 = vld [vmem:[%s1493_s24 + $0x8] sm:$0x1f]  ;;  %v441_v21 = vperm.slane %v1350_v19, 1  ;;  %v427_v23 = vperm.slane %v1350_v19, 0  ;;  %v459_v31 = vperm.slane %v1350_v19, 2  ;;  %v477_v36 = vperm.slane %v1350_v19, 3 }
  0x39   : > { %v442_v22 = vperm.slane %v1354_v20, 1  ;;  %v428_v24 = vperm.slane %v1354_v20, 0  ;;  %v460_v32 = vperm.slane %v1354_v20, 2  ;;  %v478_v37 = vperm.slane %v1354_v20, 3 }
  0x3a   : > { %s1490_s4 = smov %s1489_s11  ;;  %v414_v10 = vld [vmem:[%s1489_s11 + $0x8] sm:$0x3]  ;;  %v495_v38 = vperm.slane %v1350_v19, 4  ;;  %v496_v39 = vperm.slane %v1354_v20, 4 }
  0x3b   : > { %v413_v11 = vld [vmem:[%s1490_s4] sm:$0xff]  ;;  %v1334_v13 = vld [vmem:[%s1491_s16 + $0x8] sm:$0x3] }
  0x3c   : > { %v1339_v14 = vld [vmem:[%s1491_s16] sm:$0xff] }
  0x3d   : > { %438 = vperm.xlu1 %1026, %v410_v6   ;;  %424 = vperm.xlu0 %1025, %v410_v6   ;;  %v926_v3 = vld [vmem:[%s1310_s22 + $0x1] ss:$2 sm:$0x3] }
  0x3f   : > { %456 = vperm.xlu2 %1027, %v410_v6  }
  0x45   : > { %1029 = vset.pattern.permute.xlu1 %v1152_v7  ;;  %1028 = vset.pattern.permute.xlu0 %v1152_v7 }
  0x46   : > { %470 = vperm.xlu1 %1029, %v409_v2   ;;  %474 = vperm.xlu0 %1028, %v410_v6  }
  0x47   : > { %1030 = vset.pattern.permute.xlu2 %v1153_v8 }
  0x48   : > { %492 = vperm.xlu2 %1030, %v410_v6  }
  0x4e   : > { %1031 = vset.pattern.permute.xlu1 %v1153_v8  ;;  %1033 = vset.pattern.permute.xlu0 %v1150_v4 }
  0x4f   : > { %488 = vperm.xlu1 %1031, %v409_v2   ;;  %529 = vperm.xlu0 %1033, %v412_v9  }
  0x50   : > { %1032 = vset.pattern.permute.xlu2 %v1150_v4 }
  0x51   : > { %512 = vperm.xlu2 %1032, %v414_v10  }
  0x57   : > { %1034 = vset.pattern.permute.xlu1 %v1150_v4 }
  0x58   : > { %507 = vperm.xlu1 %1034, %v413_v11   ;;  %v550_v11 = vperm.slane %v926_v3, 0 }
  0x59   : > { %524 = vperm.xlu2 %1032, %v411_v12   ;;  %v551_v12 = vperm.slane %v926_v3, 1 }
  0x60   : > { %573 = vperm.xlu1 %1034, %v1334_v13  }
  0x61   : > { %568 = vperm.xlu2 %1032, %v1339_v14  }
  0x91   : > { %v453_v15 = vpop.permute.xlu2 %452 }
  0x92   : > { %v461_v62 = vmul.f32 %v459_v31, %v453_v15  ;;  %v462_v63 = vmul.f32 %v460_v32, %v453_v15 }
  0x99   : > { %v457_v18 = vpop.permute.xlu2 %456 }
  0x9a   : > { %v463_v40 = vmul.f32 %v459_v31, %v457_v18  ;;  %v464_v41 = vmul.f32 %v460_v32, %v457_v18 }
  0xa2   : > { %v493_v33 = vpop.permute.xlu2 %492 }
  0xa3   : > { %v499_v48 = vmul.f32 %v495_v38, %v493_v33  ;;  %v500_v49 = vmul.f32 %v496_v39, %v493_v33 }
  0xa7   : > { %v435_v16 = vpop.permute.xlu1 %434  ;;  %v420_v17 = vpop.permute.xlu0 %419 }
  0xa8   : > { %v443_v53 = vmul.f32 %v441_v21, %v435_v16  ;;  %v444_v54 = vmul.f32 %v442_v22, %v435_v16  ;;  %v429_v55 = vmul.f32 %v427_v23, %v420_v17  ;;  %v430_v56 = vmul.f32 %v428_v24, %v420_v17 }
  0xaa   : > { %v447_v0 = vadd.f32 %v443_v53, %v429_v55  ;;  %v448_v1 = vadd.f32 %v444_v54, %v430_v56 }
  0xab   : > { %v513_v61 = vpop.permute.xlu2 %512 }
  0xac   : > { %v465_v18 = vadd.f32 %v461_v62, %v447_v0  ;;  %v466_v19 = vadd.f32 %v462_v63, %v448_v1 }
  0xaf   : > { %v439_v25 = vpop.permute.xlu1 %438  ;;  %v425_v26 = vpop.permute.xlu0 %424 }
  0xb0   : > { %v445_v27 = vmul.f32 %v441_v21, %v439_v25  ;;  %v446_v28 = vmul.f32 %v442_v22, %v439_v25  ;;  %v431_v29 = vmul.f32 %v427_v23, %v425_v26  ;;  %v432_v30 = vmul.f32 %v428_v24, %v425_v26 }
  0xb2   : > { %v449_v34 = vadd.f32 %v445_v27, %v431_v29  ;;  %v450_v35 = vadd.f32 %v446_v28, %v432_v30 }
  0xb3   : > { %v525_v27 = vpop.permute.xlu2 %524 }
  0xb4   : > { %v467_v44 = vadd.f32 %v463_v40, %v449_v34  ;;  %v468_v45 = vadd.f32 %v464_v41, %v450_v35  ;;  %v537_v30 = vmul.f32 %v533_v59, %v525_v27  ;;  %v538_v31 = vmul.f32 %v534_v60, %v525_v27 }
  0xb5   : > { %v554_v33 = vmul.f32 %v550_v11, %v525_v27  ;;  %v555_v34 = vmul.f32 %v551_v12, %v525_v27 }
  0xb8   : > { %v471_v42 = vpop.permute.xlu1 %470  ;;  %v475_v43 = vpop.permute.xlu0 %474 }
  0xb9   : > { %v481_v46 = vmul.f32 %v477_v36, %v475_v43  ;;  %v482_v47 = vmul.f32 %v478_v37, %v475_v43  ;;  %v479_v9 = vmul.f32 %v477_v36, %v471_v42  ;;  %v480_v10 = vmul.f32 %v478_v37, %v471_v42 }
  0xbb   : > { %v485_v50 = vadd.f32 %v481_v46, %v467_v44  ;;  %v486_v51 = vadd.f32 %v482_v47, %v468_v45  ;;  %v483_v23 = vadd.f32 %v479_v9, %v465_v18  ;;  %v484_v24 = vadd.f32 %v480_v10, %v466_v19 }
  0xbd   : > { %v503_v57 = vadd.f32 %v499_v48, %v485_v50  ;;  %v504_v58 = vadd.f32 %v500_v49, %v486_v51  ;;  %v569_v50 = vpop.permute.xlu2 %568 }
  0xbf   : > { %v517_v7 = vadd.f32 %v513_v61, %v503_v57  ;;  %v518_v8 = vadd.f32 %v513_v61, %v504_v58 }
  0xc1   : > { %v489_v2 = vpop.permute.xlu1 %488  ;;  %v530_v4 = vpop.permute.xlu0 %529 }
  0xc2   : > { %v539_v5 = vmul.f32 %v533_v59, %v530_v4  ;;  %v540_v6 = vmul.f32 %v534_v60, %v530_v4  ;;  %v497_v15 = vmul.f32 %v495_v38, %v489_v2  ;;  %v498_v20 = vmul.f32 %v496_v39, %v489_v2 }
  0xc3   : > { %v556_v25 = vmul.f32 %v550_v11, %v530_v4  ;;  %v557_v26 = vmul.f32 %v551_v12, %v530_v4 }
  0xc4   : > { %v1368_v16 = vadd.f32 %v539_v5, %v517_v7  ;;  %v1370_v17 = vadd.f32 %v540_v6, %v518_v8  ;;  %v501_v28 = vadd.f32 %v497_v15, %v483_v23  ;;  %v502_v29 = vadd.f32 %v498_v20, %v484_v24 }
  0xc5   : > { %v560_v37 = vadd.f32 %v556_v25, %v517_v7  ;;  %v561_v38 = vadd.f32 %v557_v26, %v518_v8 }
  0xc6   : > { %v547_v21 = vmax.f32 %v1368_v16, 0.0  ;;  %v548_v22 = vmax.f32 %v1370_v17, 0.0 }
  0xc7   : > { %v564_v47 = vmax.f32 %v560_v37, 0.0  ;;  %v565_v48 = vmax.f32 %v561_v38, 0.0 }
  0xca   : > { %v508_v32 = vpop.permute.xlu1 %507 }
  0xcb   : > { %v515_v35 = vadd.f32 %v508_v32, %v501_v28  ;;  %v516_v36 = vadd.f32 %v508_v32, %v502_v29 }
  0xcd   : > { %v1374_v39 = vadd.f32 %v537_v30, %v515_v35  ;;  %v1376_v40 = vadd.f32 %v538_v31, %v516_v36  ;;  %v558_v41 = vadd.f32 %v554_v33, %v515_v35  ;;  %v559_v42 = vadd.f32 %v555_v34, %v516_v36 }
  0xcf   : > { %v545_v43 = vmax.f32 %v1374_v39, 0.0  ;;  %v546_v44 = vmax.f32 %v1376_v40, 0.0  ;;  %v562_v45 = vmax.f32 %v558_v41, 0.0  ;;  %v563_v46 = vmax.f32 %v559_v42, 0.0 }
  0xd1   : > { %v576_v53 = vmul.f32 %v569_v50, %v562_v45  ;;  %v577_v54 = vmul.f32 %v569_v50, %v563_v46 }
  0xd2   : > { %v574_v49 = vpop.permute.xlu1 %573 }
  0xd3   : > { %v578_v51 = vmul.f32 %v574_v49, %v564_v47  ;;  %v579_v52 = vmul.f32 %v574_v49, %v565_v48 }
  0xd5   : > { %v581_v55 = vsel %vm580_vm3, %v578_v51, 0.0  ;;  %v589_v56 = vsel %vm580_vm3, %v579_v52, 0.0 }
  0xd6   : > { %v582_v57 = vadd.f32 %v581_v55, %v576_v53  ;;  %v590_v58 = vadd.f32 %v589_v56, %v577_v54 }
  0xd8   : > { %v583_v59 = vrot.slane %v582_v57, 4  ;;  %v591_v60 = vrot.slane %v590_v58, 4 }
  0xda   : > { %v584_v61 = vadd.f32 %v583_v59, %v582_v57  ;;  %v592_v62 = vadd.f32 %v591_v60, %v590_v58 }
  0xdc   : > { %v585_v63 = vrot.slane %v584_v61, 2  ;;  %v593_v0 = vrot.slane %v592_v62, 2 }
  0xde   : > { %v586_v1 = vadd.f32 %v585_v63, %v584_v61  ;;  %v594_v2 = vadd.f32 %v593_v0, %v592_v62  ;;  %605 = sbr.rel (%p929_p3) target bundleno = 713 (0x2c9), region = 56 }
  0xe0   : > { %v587_v3 = vrot.slane %v586_v1, 1  ;;  %v595_v4 = vrot.slane %v594_v2, 1 }
  0xe2   : > { %v1382_v5 = vadd.f32 %v587_v3, %v586_v1  ;;  %v1384_v6 = vadd.f32 %v595_v4, %v594_v2 }
  0xe3   : > { %v1154_v9 = vmov 0   ;;  %v622_v10 = vld [vmem:[#allocation3] sm:$0x1]  ;;  %vm661_vm4 = vcmask 0   ;;  %v611_v19 = vsel %vm580_vm3, %v547_v21, 0.0  ;;  %v612_v15 = vsel %vm580_vm3, %v548_v22, 0.0 }
  0xe4   : > { %v623_v7 = vmax.f32 %v1382_v5, %v1384_v6  ;;  %1035 = vset.pattern.permute.xlu0 %v1154_v9  ;;  %v613_v20 = vadd.f32 %v612_v15, %v611_v19  ;;  %vm646_vm5 = vcmask 1040384   ;;  %v608_v34 = vadd.f32 %v546_v44, %v545_v43  ;;  %v607_v47 = vld [vmem:[#allocation2 + $0x8] sm:$0x3]  ;;  %v606_v49 = vld [vmem:[#allocation2] sm:$0xff]  ;;  %v641_v54 = vld [vmem:[#allocation4] sm:$0x1] }
  0xe5   : > { %vm620_vm6 = vcmask 1024   ;;  %vm618_vm7 = vcmask 7168  }
  0xe6   : > { %624 = vmax.xlane.f32.xlu0 %v623_v7  ;;  %614 = vadd.xlane.f32.xlu2 %v613_v20 }
 0x159   : > { %v625_v8 = vpop.xlane.xlu0 %624  ;;  %v615_v46 = vpop.xlane.xlu2 %614 }
 0x15a   : > { %935 = vpush %v625_v8  ;;  %v617_v50 = vadd.f32 %v615_v46, %v607_v47 }
 0x15c   : > { %621 = vst.msk [vmem:[#allocation2 + $0x8] sm:$0x3] %vm620_vm6, %v617_v50 }
 0x18b   : > { %s936_s18 = spop %935 }
 0x18c   : > { %v627_v11 = vstv %s936_s18 }
 0x18d   : > { %v628_v12 = vmax.f32 %v622_v10, %v627_v11 }
 0x18f   : > { %v642_v18 = vsub.f32 %v622_v10, %v628_v12  ;;  %663 = vst.msk [vmem:[#allocation3] sm:$0x1] %vm661_vm4, %v628_v12  ;;  %631 = vperm.xlu0 %1035, %v628_v12  }
 0x191   : > { %v643_v52 = vmul.f32 1.442695, %v642_v18 }
 0x201   : > { %v632_v23 = vpop.permute.xlu0 %631 }
 0x202   : > { %v634_v24 = vperm.slane %v632_v23, 0 }
 0x204   : > { %v635_v25 = vsub.f32 %v1382_v5, %v634_v24  ;;  %v636_v26 = vsub.f32 %v1384_v6, %v634_v24 }
 0x206   : > { %v637_v27 = vmul.f32 1.442695, %v635_v25  ;;  %v639_v28 = vmul.f32 1.442695, %v636_v26 }
 0x208   : > { %1036 = vpow2.f32 %v637_v27 }
 0x209   : > { %1038 = vpow2.f32 %v639_v28 }
 0x20a   : > { %1040 = vpow2.f32 %v643_v52 }
 0x20e   : > { %v1037_v29 = vpop.eup %1036 }
 0x20f   : > { %v1039_v30 = vpop.eup %1038  ;;  %v647_v31 = vsel %vm646_vm5, %v1037_v29, 0.0 }
 0x210   : > { %v648_v32 = vsel %vm646_vm5, %v1039_v30, 0.0  ;;  %v1041_v53 = vpop.eup %1040 }
 0x211   : > { %v649_v33 = vadd.f32 %v648_v32, %v647_v31  ;;  %v645_v55 = vmul.f32 %v1041_v53, %v641_v54 }
 0x213   : > { %650 = vadd.xlane.f32.xlu1 %v649_v33 }
 0x21b   : > { %609 = vadd.xlane.f32.xlu1 %v608_v34 }
 0x286   : > { %v651_v35 = vpop.xlane.xlu1 %650 }
 0x287   : > { %v652_v36 = vrot.slane %v651_v35, 4 }
 0x289   : > { %v653_v37 = vadd.f32 %v652_v36, %v651_v35 }
 0x28b   : > { %v654_v38 = vrot.slane %v653_v37, 2 }
 0x28d   : > { %v655_v41 = vadd.f32 %v654_v38, %v653_v37 }
 0x28e   : > { %v610_v48 = vpop.xlane.xlu1 %609 }
 0x28f   : > { %v656_v42 = vrot.slane %v655_v41, 1  ;;  %v616_v51 = vadd.f32 %v610_v48, %v606_v49 }
 0x291   : > { %v657_v45 = vadd.f32 %v656_v42, %v655_v41  ;;  %619 = vst.msk [vmem:[#allocation2] sm:$0xff] %vm618_vm7, %v616_v51 }
 0x293   : > { %937 = vpush %v657_v45 }
 0x2c4   : > { %s938_s22 = spop %937 }
 0x2c5   : > { %v659_v56 = vstv %s938_s22 }
 0x2c6   : > { %v660_v57 = vadd.f32 %v659_v56, %v645_v55 }
 0x2c8   : > { %662 = vst.msk [vmem:[#allocation4] sm:$0x1] %vm661_vm4, %v660_v57 }
 0x2c9 PF: > { %p930_p4 = scmp.le.s32.totalorder %s1346_s19, 1000 }
 0x2cb   : > { %666 = sbr.rel (%p930_p4) target bundleno = 1216 (0x4c0), region = 60 }
 0x2d0   : > { %v667_v58 = vlaneseq  ;;  %v670_v59 = vstv %s928_s10  ;;  %v1155_v4 = vmov 0   ;;  %v701_v7 = vld [vmem:[#allocation3] sm:$0x1]  ;;  %vm742_vm10 = vcmask 0   ;;  %v686_v41 = vld [vmem:[#allocation2 + $0x8] sm:$0x3] }
 0x2d1   : > { %1042 = vset.pattern.permute.xlu0 %v1155_v4  ;;  %vm727_vm11 = vcmask 1040384   ;;  %v685_v45 = vld [vmem:[#allocation2] sm:$0xff]  ;;  %vm699_vm12 = vcmask 1024   ;;  %vm697_vm13 = vcmask 7168   ;;  %v722_v47 = vld [vmem:[#allocation4] sm:$0x1] }
 0x2d2   : > { %v668_v60 = vand.u32 127, %v667_v58 }
 0x2d4   : > { %v669_v61 = vadd.s32 128, %v668_v60  ;;  %v671_v62 = vadd.s32 %v670_v59, %v668_v60 }
 0x2d6   : > { %v672_v63 = vadd.s32 %v670_v59, %v669_v61  ;;  %vm673_vm8 = vcmp.lt.s32.totalorder %v671_v62, 1000 }
 0x2d7   : > { %v683_v0 = vsel %vm673_vm8, %v1382_v5, -1e+30  ;;  %v681_v5 = vsel %vm673_vm8, %v547_v21, 0.0  ;;  %v679_v29 = vsel %vm673_vm8, %v545_v43, 0.0 }
 0x2d8   : > { %vm674_vm9 = vcmp.lt.s32.totalorder %v672_v63, 1000  ;;  %v690_v11 = vsel %vm580_vm3, %v681_v5, 0.0 }
 0x2d9   : > { %v684_v1 = vsel %vm674_vm9, %v1384_v6, -1e+30  ;;  %v682_v6 = vsel %vm674_vm9, %v548_v22, 0.0  ;;  %v680_v30 = vsel %vm674_vm9, %v546_v44, 0.0 }
 0x2da   : > { %v702_v2 = vmax.f32 %v683_v0, %v684_v1  ;;  %v691_v12 = vsel %vm580_vm3, %v682_v6, 0.0  ;;  %v687_v31 = vadd.f32 %v680_v30, %v679_v29 }
 0x2db   : > { %v692_v18 = vadd.f32 %v691_v12, %v690_v11 }
 0x2dc   : > { %703 = vmax.xlane.f32.xlu0 %v702_v2 }
 0x2dd   : > { %693 = vadd.xlane.f32.xlu2 %v692_v18 }
 0x34f   : > { %v704_v3 = vpop.xlane.xlu0 %703 }
 0x350   : > { %939 = vpush %v704_v3  ;;  %v694_v42 = vpop.xlane.xlu2 %693 }
 0x351   : > { %v696_v46 = vadd.f32 %v694_v42, %v686_v41 }
 0x353   : > { %700 = vst.msk [vmem:[#allocation2 + $0x8] sm:$0x3] %vm699_vm12, %v696_v46 }
 0x381   : > { %s940_s5 = spop %939 }
 0x382   : > { %v706_v8 = vstv %s940_s5 }
 0x383   : > { %v707_v9 = vmax.f32 %v701_v7, %v706_v8 }
 0x385   : > { %v723_v10 = vsub.f32 %v701_v7, %v707_v9  ;;  %744 = vst.msk [vmem:[#allocation3] sm:$0x1] %vm742_vm10, %v707_v9  ;;  %710 = vperm.xlu0 %1042, %v707_v9  }
 0x387   : > { %v724_v40 = vmul.f32 1.442695, %v723_v10 }
 0x3f7   : > { %v711_v19 = vpop.permute.xlu0 %710 }
 0x3f8   : > { %v713_v15 = vperm.slane %v711_v19, 0 }
 0x3fa   : > { %v714_v20 = vsub.f32 %v683_v0, %v713_v15  ;;  %v715_v23 = vsub.f32 %v684_v1, %v713_v15 }
 0x3fc   : > { %v716_v24 = vmul.f32 1.442695, %v714_v20  ;;  %v718_v25 = vmul.f32 1.442695, %v715_v23 }
 0x3fe   : > { %1043 = vpow2.f32 %v716_v24 }
 0x3ff   : > { %1045 = vpow2.f32 %v718_v25 }
 0x400   : > { %1047 = vpow2.f32 %v724_v40 }
 0x404   : > { %v1044_v16 = vpop.eup %1043 }
 0x405   : > { %v1046_v21 = vpop.eup %1045  ;;  %v720_v17 = vsel %vm673_vm8, %v1044_v16, 0.0 }
 0x406   : > { %v721_v22 = vsel %vm674_vm9, %v1046_v21, 0.0  ;;  %v728_v26 = vsel %vm727_vm11, %v720_v17, 0.0  ;;  %v1048_v44 = vpop.eup %1047 }
 0x407   : > { %v729_v27 = vsel %vm727_vm11, %v721_v22, 0.0  ;;  %v726_v48 = vmul.f32 %v1048_v44, %v722_v47 }
 0x408   : > { %v730_v28 = vadd.f32 %v729_v27, %v728_v26 }
 0x40a   : > { %731 = vadd.xlane.f32.xlu1 %v730_v28 }
 0x412   : > { %688 = vadd.xlane.f32.xlu1 %v687_v31 }
 0x47d   : > { %v732_v32 = vpop.xlane.xlu1 %731 }
 0x47e   : > { %v733_v33 = vrot.slane %v732_v32, 4 }
 0x480   : > { %v734_v34 = vadd.f32 %v733_v33, %v732_v32 }
 0x482   : > { %v735_v35 = vrot.slane %v734_v34, 2 }
 0x484   : > { %v736_v36 = vadd.f32 %v735_v35, %v734_v34 }
 0x485   : > { %v689_v39 = vpop.xlane.xlu1 %688 }
 0x486   : > { %v737_v37 = vrot.slane %v736_v36, 1  ;;  %v695_v43 = vadd.f32 %v689_v39, %v685_v45 }
 0x488   : > { %v738_v38 = vadd.f32 %v737_v37, %v736_v36  ;;  %698 = vst.msk [vmem:[#allocation2] sm:$0xff] %vm697_vm13, %v695_v43 }
 0x48a   : > { %941 = vpush %v738_v38 }
 0x4bb   : > { %s942_s25 = spop %941 }
 0x4bc   : > { %v740_v49 = vstv %s942_s25 }
 0x4bd   : > { %v741_v50 = vadd.f32 %v740_v49, %v726_v48 }
 0x4bf   : > { %743 = vst.msk [vmem:[#allocation4] sm:$0x1] %vm742_vm10, %v741_v50 }
 0x4c0 PF: > { %p931_p5 = scmp.ne.s32.totalorder %s1129_s30, 1 }
 0x4c2   : > { %748 = sbr.rel (%p931_p5) target bundleno = 1409 (0x581), region = 64 }
 0x4c7   : > { %v749_v51 = vld [vmem:[#allocation2] sm:$0xff]  ;;  %v750_v52 = vld [vmem:[#allocation2 + $0x8] sm:$0x3]  ;;  %vm753_vm14 = vcmask 7168   ;;  %vm755_vm15 = vcmask 1024   ;;  %vm768_vm0 = vcmask 0  }
 0x4c8   : > { %v751_v53 = vmul.f32 %v749_v51, %v1339_v14  ;;  %v752_v54 = vmul.f32 %v750_v52, %v1334_v13  ;;  %v770_v1 = vld [vmem:[#allocation3] sm:$0x1]  ;;  %v772_v14 = vld [vmem:[#allocation4] sm:$0x1] }
 0x4c9   : > { %771 = vst.msk [vmem:[%s392_s26] sm:$0x1] %vm768_vm0, %v770_v1 }
 0x4ca   : > { %v754_v55 = vsel %vm753_vm14, %v751_v53, 0.0  ;;  %v756_v56 = vsel %vm755_vm15, %v752_v54, 0.0  ;;  %773 = vst.msk [vmem:[%s395_s17] sm:$0x1] %vm768_vm0, %v772_v14 }
 0x4cb   : > { %v757_v57 = vadd.f32 %v756_v56, %v754_v55 }
 0x4cd   : > { %758 = vadd.xlane.f32.xlu0 %v757_v57 }
 0x540   : > { %v759_v58 = vpop.xlane.xlu0 %758 }
 0x541   : > { %v760_v59 = vrot.slane %v759_v58, 4 }
 0x543   : > { %v761_v60 = vadd.f32 %v760_v59, %v759_v58 }
 0x545   : > { %v762_v61 = vrot.slane %v761_v60, 2 }
 0x547   : > { %v763_v62 = vadd.f32 %v762_v61, %v761_v60 }
 0x549   : > { %v764_v63 = vrot.slane %v763_v62, 1 }
 0x54b   : > { %v765_v0 = vadd.f32 %v764_v63, %v763_v62 }
 0x54d   : > { %943 = vpush %v765_v0 }
 0x57e   : > { %s944_s10 = spop %943 }
 0x57f   : > { %v767_v13 = vstv %s944_s10 }
 0x580   : > { %769 = vst.msk [vmem:[%s389_s23] sm:$0x1] %vm768_vm0, %v767_v13 }
 0x581 PF: > { %s22_s12 = sadd.s32 1, %s1145_s12   ;;  %s1494_s26 = smov %s1267_s27 }
 0x582   : > { %p19_p6 = scmp.ge.s32.totalorder %s22_s12, 6   ;;  %s1495_s30 = sld [smem:[#allocation8_spill]] }
 0x583   : > { %s1496_s9 = sld [smem:[#allocation9_spill]]  ;;  %s1497_s27 = smov %s1121_s28 }
 0x584   : > { %s1498_s28 = smov %s1125_s29  ;;  %s1499_s29 = smov %s1494_s26 }
 0x585   : > { %s1500_s10 = smov %s1503_s14  ;;  %s1501_s11 = smov %s1507_s15 }
 0x586   :  { %21 = sbr.rel (!%p19_p6) target bundleno = 8 (0x8), region = 128 }
 0x58b   :  { %815 = vsyncpa [#allocation6], 1 }
 0x58c   :  { %817 = vsyncpa [#allocation6 + $0x1], 1 }

</bundles_post_ra>
